<compile_context>
chip_gen: v7x
topology: tpu7x:2x2x1
jax: 0.10.0
libtpu: 0.0.40
codegen_flags: <defaults>
</compile_context>

<pallas_src>
import jax
import jax.numpy as jnp
from jax.experimental import pallas as pl
from jax.experimental.pallas import tpu as pltpu

_MB = 1024 * 1024


# ----------------------------- helpers -------------------------------------


def _round_up(x, n):
    return ((x + n - 1) // n) * n


def _pad2d(a, rows, cols):
    pr, pc = rows - a.shape[0], cols - a.shape[1]
    if pr or pc:
        a = jnp.pad(a, ((0, pr), (0, pc)))
    return a


def _pad_lane_dim(d, prefer_align):
    """Pad a lane dim to >=128; use 256 alignment only when the waste is small."""
    p128 = _round_up(d, 128)
    if prefer_align > 128:
        p = _round_up(d, prefer_align)
        if p == p128 or (p - p128) * 8 <= p128:   # <= ~12.5% extra padding
            return p
    return p128


def _device_config():
    """Generation-aware budgets / tile preferences."""
    try:
        kind = jax.devices()[0].device_kind.lower()
    except Exception:  # pragma: no cover - defensive
        kind = ""
    if "v7" in kind:
        # 64 MiB VMEM / TC, 2 TCs, very high HBM BW -> resident weights when
        # possible, and always >= 2 row tiles for the two TensorCores.
        return dict(name="v7x", lane_align=256, th=512, tm_cap=1024,
                    budget=40 * _MB, resident_budget=28 * _MB,
                    vmem_limit=48 * _MB, num_cores=2, weight_buffers=2)
    if "v6" in kind:
        return dict(name="v6e", lane_align=256, th=512, tm_cap=1024,
                    budget=80 * _MB, resident_budget=48 * _MB,
                    vmem_limit=100 * _MB, num_cores=1, weight_buffers=2)
    if "v5" in kind:
        # Lowest HBM BW: large row tiles + deeper weight pipeline when tiled.
        return dict(name="v5e", lane_align=128, th=512, tm_cap=512,
                    budget=80 * _MB, resident_budget=48 * _MB,
                    vmem_limit=100 * _MB, num_cores=1, weight_buffers=3)
    # Unknown chip: stay inside the smallest default scoped-VMEM limit.
    return dict(name="unknown", lane_align=128, th=256, tm_cap=512,
                budget=12 * _MB, resident_budget=8 * _MB,
                vmem_limit=None, num_cores=1, weight_buffers=2)


def _weight_spec(shape, index_map, buffers):
    """BlockSpec for a streamed weight tile, optionally with deeper buffering."""
    if buffers != 2:
        try:
            return pl.BlockSpec(shape, index_map,
                                pipeline_mode=pl.Buffered(buffers))
        except Exception:  # older API without pipeline_mode / Buffered
            pass
    return pl.BlockSpec(shape, index_map)


# ------------------------------ kernels --------------------------------------


def _ffn_kernel_resident(x_ref, w1_ref, b1_ref, w2_ref, b2_ref, o_ref):
    # relu(x @ W1 + b1) @ W2 + b2 with W1/W2 fully VMEM resident.
    h = jnp.dot(x_ref[...], w1_ref[...], preferred_element_type=jnp.float32)
    h = jnp.maximum(h + b1_ref[...], 0.0)
    out = jnp.dot(h.astype(w2_ref.dtype), w2_ref[...],
                  preferred_element_type=jnp.float32)
    o_ref[...] = (out + b2_ref[...]).astype(o_ref.dtype)


def _ffn_kernel_tiled_accout(x_ref, w1_ref, b1_ref, w2_ref, b2_ref, o_ref):
    # Hidden-tiled; accumulate straight into the f32, VMEM-resident output tile
    # (its block index is constant across the hidden axis) -> no f32 scratch.
    hk = pl.program_id(1)
    h = jnp.dot(x_ref[...], w1_ref[...], preferred_element_type=jnp.float32)
    h = jnp.maximum(h + b1_ref[...], 0.0)
    contrib = jnp.dot(h.astype(w2_ref.dtype), w2_ref[...],
                      preferred_element_type=jnp.float32)

    @pl.when(hk == 0)
    def _init():
        o_ref[...] = contrib + b2_ref[...]

    @pl.when(hk > 0)
    def _acc():
        o_ref[...] += contrib


def _ffn_kernel_tiled_scratch(x_ref, w1_ref, b1_ref, w2_ref, b2_ref, o_ref,
                              acc_ref):
    # Hidden-tiled; f32 scratch accumulator, single cast/store at the end.
    hk = pl.program_id(1)

    @pl.when(hk == 0)
    def _zero():
        acc_ref[...] = jnp.zeros_like(acc_ref)

    h = jnp.dot(x_ref[...], w1_ref[...], preferred_element_type=jnp.float32)
    h = jnp.maximum(h + b1_ref[...], 0.0)
    acc_ref[...] += jnp.dot(h.astype(w2_ref.dtype), w2_ref[...],
                            preferred_element_type=jnp.float32)

    @pl.when(hk == pl.num_programs(1) - 1)
    def _finalize():
        o_ref[...] = (acc_ref[...] + b2_ref[...]).astype(o_ref.dtype)


# --------------------------- parameter prep ----------------------------------


def prepare_ffn_params(w1, b1, w2, b2, *, compute_dtype=jnp.bfloat16,
                       block_hidden=None, force_hidden_tiling=False,
                       device_cfg=None):
    """Pad + cast the FFN weights ONCE (hoisted out of the per-call path).

    Returns a dict consumed by feed_forward_network(); reuse it across forward
    passes so the f32->bf16 conversion / zero padding is never re-emitted.
    Zero padding is mathematically inert: relu(x@0 + 0) = 0 flows through the
    zero rows of W2, and zero b2 columns are sliced away.
    """
    cfg = dict(device_cfg) if device_cfg is not None else _device_config()
    d_in, d_hidden = w1.shape
    d_out = w2.shape[1]
    assert b1.shape == (d_hidden,) and w2.shape[0] == d_hidden
    assert b2.shape == (d_out,)

    compute_dtype = jnp.dtype(compute_dtype)
    cbytes = compute_dtype.itemsize
    align = cfg["lane_align"]
    d_in_p = _pad_lane_dim(d_in, align)
    d_out_p = _pad_lane_dim(d_out, align)

    # Resident path: keep full W1/W2 in VMEM (constant index_map, DMA'd once).
    d_h_lane = _pad_lane_dim(d_hidden, align)
    resident_w_bytes = 2 * cbytes * (d_in_p * d_h_lane + d_h_lane * d_out_p)
    use_resident = (not force_hidden_tiling) and \
        (resident_w_bytes <= cfg["resident_budget"])

    if use_resident:
        th = None
        d_h_p = d_h_lane
    else:
        if block_hidden is not None:
            th = max(128, _round_up(int(block_hidden), 128))
        else:
            th = int(cfg["th"])
            # Last-resort shrink for extremely wide models so a 16-row tile
            # still fits; otherwise prefer padding d_hidden up to th.
            min_row_tile = 16 * (2 * cbytes * d_in_p + 12 * d_out_p)
            while th > 128 and (cfg["weight_buffers"] * cbytes * th *
                                (d_in_p + d_out_p) + min_row_tile) > cfg["budget"]:
                th -= 128
        th = min(th, _round_up(d_hidden, 128))
        d_h_p = _round_up(d_hidden, th)   # pad d_ff UP instead of shrinking th

    w1_p = _pad2d(w1, d_in_p, d_h_p).astype(compute_dtype)
    w2_p = _pad2d(w2, d_h_p, d_out_p).astype(compute_dtype)
    b1_p = _pad2d(b1.reshape(1, d_hidden), 1, d_h_p).astype(jnp.float32)
    b2_p = _pad2d(b2.reshape(1, d_out), 1, d_out_p).astype(jnp.float32)

    return dict(cfg=cfg, compute_dtype=compute_dtype,
                d_in=d_in, d_hidden=d_hidden, d_out=d_out,
                d_in_p=d_in_p, d_h_p=d_h_p, d_out_p=d_out_p, th=th,
                w1=w1_p, b1=b1_p, w2=w2_p, b2=b2_p)


# ------------------------------ wrapper --------------------------------------


def feed_forward_network(x, params, *, block_m=None, vmem_limit_bytes=None):
    """Fused FFN forward: relu(x @ w1 + b1) @ w2 + b2 (params from prepare_ffn_params)."""
    cfg = params["cfg"]
    compute_dtype = params["compute_dtype"]
    d_in, d_hidden, d_out = params["d_in"], params["d_hidden"], params["d_out"]
    d_in_p, d_h_p, d_out_p = params["d_in_p"], params["d_h_p"], params["d_out_p"]
    th = params["th"]
    w1_p, b1_p, w2_p, b2_p = params["w1"], params["b1"], params["w2"], params["b2"]

    orig_shape = x.shape
    out_dtype = x.dtype
    out_bytes = jnp.dtype(out_dtype).itemsize
    cbytes = compute_dtype.itemsize

    x2d = x.reshape(-1, d_in)
    m = x2d.shape[0]

    resident = th is None
    direct_out = jnp.dtype(out_dtype) == jnp.dtype(jnp.float32)

    # ---- row-tile sizing from the real per-step VMEM footprint ----
    if resident:
        fixed = 2 * cbytes * (d_in_p * d_h_p + d_h_p * d_out_p) \
            + 2 * 4 * (d_h_p + d_out_p)
        per_row = 2 * cbytes * d_in_p + 2 * out_bytes * d_out_p
    else:
        wb = cfg["weight_buffers"]
        fixed = wb * cbytes * (d_in_p * th + th * d_out_p) \
            + 2 * 4 * (th + d_out_p)
        per_row = 2 * cbytes * d_in_p + 2 * out_bytes * d_out_p \
            + (0 if direct_out else 4 * d_out_p)

    if block_m is not None:
        tm = max(16, (int(block_m) // 16) * 16)
    else:
        tm = max(16, (cfg["budget"] - fixed) // max(per_row, 1))
        tm = min(int(tm), cfg["tm_cap"])
        tm = max(16, (tm // 16) * 16)
        # v7x: make sure both TensorCores get at least one row tile.
        if cfg["num_cores"] > 1 and m > 16:
            tm_split = max(16, _round_up(-(-m // cfg["num_cores"]), 16))
            tm = min(tm, tm_split)
    tm = min(tm, _round_up(m, 16))
    tm = max(16, (tm // 16) * 16)
    m_p = _round_up(m, tm)

    # Only the activation is padded/cast per call (weights were prepared once).
    x2d_p = _pad2d(x2d, m_p, d_in_p).astype(compute_dtype)

    if vmem_limit_bytes is None:
        vmem_limit_bytes = cfg["vmem_limit"]

    flops = 2 * m * (d_in * d_hidden + d_hidden * d_out)
    bytes_accessed = (x2d_p.size * cbytes
                      + w1_p.size * cbytes + w2_p.size * cbytes
                      + b1_p.size * 4 + b2_p.size * 4
                      + m_p * d_out_p * out_bytes)
    cost = pl.CostEstimate(flops=int(flops), transcendentals=0,
                           bytes_accessed=int(bytes_accessed))

    if resident:
        grid_spec = pltpu.PrefetchScalarGridSpec(
            num_scalar_prefetch=0,
            grid=(m_p // tm,),
            in_specs=[
                pl.BlockSpec((tm, d_in_p), lambda i: (i, 0)),        # x tile
                pl.BlockSpec((d_in_p, d_h_p), lambda i: (0, 0)),     # W1 (resident)
                pl.BlockSpec((1, d_h_p), lambda i: (0, 0)),          # b1
                pl.BlockSpec((d_h_p, d_out_p), lambda i: (0, 0)),    # W2 (resident)
                pl.BlockSpec((1, d_out_p), lambda i: (0, 0)),        # b2
            ],
            out_specs=pl.BlockSpec((tm, d_out_p), lambda i: (i, 0)),
        )
        kernel = _ffn_kernel_resident
        dims = ("parallel",)
    else:
        wb = cfg["weight_buffers"]
        in_specs = [
            pl.BlockSpec((tm, d_in_p), lambda i, hk: (i, 0)),            # x tile
            _weight_spec((d_in_p, th), lambda i, hk: (0, hk), wb),       # W1 tile
            pl.BlockSpec((1, th), lambda i, hk: (0, hk)),                # b1 tile
            _weight_spec((th, d_out_p), lambda i, hk: (hk, 0), wb),      # W2 tile
            pl.BlockSpec((1, d_out_p), lambda i, hk: (0, 0)),            # b2
        ]
        out_spec = pl.BlockSpec((tm, d_out_p), lambda i, hk: (i, 0))
        if direct_out:
            kernel = _ffn_kernel_tiled_accout
            scratch = []
        else:
            kernel = _ffn_kernel_tiled_scratch
            scratch = [pltpu.VMEM((tm, d_out_p), jnp.float32)]
        grid_spec = pltpu.PrefetchScalarGridSpec(
            num_scalar_prefetch=0,
            grid=(m_p // tm, d_h_p // th),
            in_specs=in_specs,
            out_specs=out_spec,
            scratch_shapes=scratch,
        )
        kernel = kernel
        dims = ("parallel", "arbitrary")   # hidden (reduction) axis stays last

    out2d_p = pl.pallas_call(
        kernel,
        out_shape=jax.ShapeDtypeStruct((m_p, d_out_p), out_dtype),
        grid_spec=grid_spec,
        compiler_params=pltpu.CompilerParams(
            dimension_semantics=dims,
            vmem_limit_bytes=vmem_limit_bytes,
        ),
        cost_estimate=cost,
    )(x2d_p, w1_p, b1_p, w2_p, b2_p)

    out2d = out2d_p[:m, :d_out]
    return out2d.reshape(orig_shape[:-1] + (d_out,))


# --------------------------- reference & init --------------------------------


def _reference(x, w1, b1, w2, b2, compute_dtype=jnp.bfloat16):
    """Pure-JAX reference following the same bf16-operand / f32-accum path."""
    h = jnp.dot(x.astype(compute_dtype), w1.astype(compute_dtype),
                preferred_element_type=jnp.float32) + b1.astype(jnp.float32)
    h = jnp.maximum(h, 0.0)
    o = jnp.dot(h.astype(compute_dtype), w2.astype(compute_dtype),
                preferred_element_type=jnp.float32) + b2.astype(jnp.float32)
    return o.astype(x.dtype)


def init_params(key, d_input, d_hidden, d_output, dtype=jnp.float32):
    """Deterministic init mimicking nn.Linear's U(-1/sqrt(fan_in), 1/sqrt(fan_in))."""
    k1, k2, k3, k4 = jax.random.split(key, 4)
    bound1 = 1.0 / (d_input ** 0.5)
    bound2 = 1.0 / (d_hidden ** 0.5)
    # stored directly in the (in, out) layout the kernel consumes
    w1 = jax.random.uniform(k1, (d_input, d_hidden), dtype, -bound1, bound1)
    b1 = jax.random.uniform(k2, (d_hidden,), dtype, -bound1, bound1)
    w2 = jax.random.uniform(k3, (d_hidden, d_output), dtype, -bound2, bound2)
    b2 = jax.random.uniform(k4, (d_output,), dtype, -bound2, bound2)
    return w1, b1, w2, b2


if __name__ == "__main__":
    key = jax.random.PRNGKey(0)

    # --- test 1: small shapes implied by the transformer FFN module ----------
    # (resident-weight path: W1/W2 live in VMEM, 1-D row grid)
    batch, seq = 2, 8
    d_input, d_hidden, d_output = 32, 64, 32
    kx, kp, key = jax.random.split(key, 3)
    x = jax.random.normal(kx, (batch, seq, d_input), jnp.float32)
    w1, b1, w2, b2 = init_params(kp, d_input, d_hidden, d_output)

    prep1 = prepare_ffn_params(w1, b1, w2, b2)          # pad/cast once
    out = feed_forward_network(x, prep1)
    out = jax.block_until_ready(out)
    ref = _reference(x, w1, b1, w2, b2)
    assert out.shape == (batch, seq, d_output)
    assert jnp.allclose(out, ref, atol=1e-2, rtol=1e-2)

    # --- test 2: hidden-tiled path, multiple row/hidden tiles, f32 output ----
    # (accumulates directly into the resident output block, no scratch)
    m2, d_in2, d_hid2, d_out2 = 144, 256, 512, 384
    kx2, kp2 = jax.random.split(key)
    x2 = jax.random.normal(kx2, (m2, d_in2), jnp.float32)
    p_w1, p_b1, p_w2, p_b2 = init_params(kp2, d_in2, d_hid2, d_out2)

    prep2 = prepare_ffn_params(p_w1, p_b1, p_w2, p_b2,
                               force_hidden_tiling=True, block_hidden=128)
    out2 = feed_forward_network(x2, prep2, block_m=64)
    out2 = jax.block_until_ready(out2)
    ref2 = _reference(x2, p_w1, p_b1, p_w2, p_b2)
    assert out2.shape == (m2, d_out2)
    assert jnp.allclose(out2, ref2, atol=1e-2, rtol=1e-2)

    # --- test 3: hidden-tiled path with non-f32 output (f32 scratch kernel) --
    x3 = x2.astype(jnp.bfloat16)
    out3 = feed_forward_network(x3, prep2, block_m=64)
    out3 = jax.block_until_ready(out3)
    ref3 = _reference(x3, p_w1, p_b1, p_w2, p_b2)
    assert out3.dtype == jnp.bfloat16 and out3.shape == (m2, d_out2)
    assert jnp.allclose(out3.astype(jnp.float32), ref3.astype(jnp.float32),
                        atol=5e-2, rtol=5e-2)

    print("KERNEL_OK")
</pallas_src>

<mosaic_0001>
module attributes {stable_mosaic.version = 11 : i64} {
  func.func @_ffn_kernel_resident(%arg0: i32, %arg1: memref<16x128xbf16, #tpu.memory_space<vmem>>, %arg2: memref<128x128xbf16, #tpu.memory_space<vmem>>, %arg3: memref<1x128xf32, #tpu.memory_space<vmem>>, %arg4: memref<128x128xbf16, #tpu.memory_space<vmem>>, %arg5: memref<1x128xf32, #tpu.memory_space<vmem>>, %arg6: memref<16x128xf32, #tpu.memory_space<vmem>>) attributes {dimension_semantics = [#tpu.dimension_semantics<parallel>], iteration_bounds = array<i64: 1>, scalar_prefetch = 0 : i64, scratch_operands = 0 : i64, tpu.core_type = #tpu.core_type<tc>, window_params = [{transform_indices = @transform_0, window_bounds = array<i64: 16, 128>}, {pipeline_mode = #tpu.pipeline_mode<synchronous>, transform_indices = @transform_1, window_bounds = array<i64: 128, 128>}, {pipeline_mode = #tpu.pipeline_mode<synchronous>, transform_indices = @transform_2, window_bounds = array<i64: 1, 128>}, {pipeline_mode = #tpu.pipeline_mode<synchronous>, transform_indices = @transform_3, window_bounds = array<i64: 128, 128>}, {pipeline_mode = #tpu.pipeline_mode<synchronous>, transform_indices = @transform_4, window_bounds = array<i64: 1, 128>}, {transform_indices = @transform_5, window_bounds = array<i64: 16, 128>}]} {
    %c0 = arith.constant 0 : index
    %c0_0 = arith.constant 0 : index
    %0 = vector.load %arg1[%c0, %c0_0] : memref<16x128xbf16, #tpu.memory_space<vmem>>, vector<16x128xbf16>
    %c0_1 = arith.constant 0 : index
    %c0_2 = arith.constant 0 : index
    %1 = vector.load %arg2[%c0_1, %c0_2] : memref<128x128xbf16, #tpu.memory_space<vmem>>, vector<128x128xbf16>
    %cst = arith.constant dense<0.000000e+00> : vector<16x128xf32>
    %2 = tpu.matmul %0, %1, %cst {dimension_numbers = #tpu.dot_dimension_numbers<[1], [0], [0], [1], [0, 0, 1, 1], [], []>} : vector<16x128xbf16>, vector<128x128xbf16>, vector<16x128xf32> -> vector<16x128xf32>
    %c0_3 = arith.constant 0 : index
    %c0_4 = arith.constant 0 : index
    %3 = vector.load %arg3[%c0_3, %c0_4] : memref<1x128xf32, #tpu.memory_space<vmem>>, vector<1x128xf32>
    %4 = vector.broadcast %3 : vector<1x128xf32> to vector<16x128xf32>
    %5 = arith.addf %2, %4 : vector<16x128xf32>
    %cst_5 = arith.constant 0.000000e+00 : f32
    %6 = vector.broadcast %cst_5 : f32 to vector<16x128xf32>
    %7 = arith.maximumf %5, %6 : vector<16x128xf32>
    %8 = arith.truncf %7 : vector<16x128xf32> to vector<16x128xbf16>
    %c0_6 = arith.constant 0 : index
    %c0_7 = arith.constant 0 : index
    %9 = vector.load %arg4[%c0_6, %c0_7] : memref<128x128xbf16, #tpu.memory_space<vmem>>, vector<128x128xbf16>
    %cst_8 = arith.constant dense<0.000000e+00> : vector<16x128xf32>
    %10 = tpu.matmul %8, %9, %cst_8 {dimension_numbers = #tpu.dot_dimension_numbers<[1], [0], [0], [1], [0, 0, 1, 1], [], []>} : vector<16x128xbf16>, vector<128x128xbf16>, vector<16x128xf32> -> vector<16x128xf32>
    %c0_9 = arith.constant 0 : index
    %c0_10 = arith.constant 0 : index
    %11 = vector.load %arg5[%c0_9, %c0_10] : memref<1x128xf32, #tpu.memory_space<vmem>>, vector<1x128xf32>
    %12 = vector.broadcast %11 : vector<1x128xf32> to vector<16x128xf32>
    %13 = arith.addf %10, %12 : vector<16x128xf32>
    %c0_11 = arith.constant 0 : index
    %c0_12 = arith.constant 0 : index
    %14 = vector.load %arg6[%c0_11, %c0_12] : memref<16x128xf32, #tpu.memory_space<vmem>>, vector<16x128xf32>
    tpu.vector_store %arg6[%c0_11, %c0_12], %13 {strides = array<i32>} : memref<16x128xf32, #tpu.memory_space<vmem>>, vector<16x128xf32>,
    return
  }
  func.func @transform_0(%arg0: i32) -> (i32, i32) {
    %c0_i32 = arith.constant 0 : i32
    %c0_i32_0 = arith.constant 0 : i32
    return %arg0, %c0_i32 : i32, i32
  }
  func.func @transform_1(%arg0: i32) -> (i32, i32) {
    %c0_i32 = arith.constant 0 : i32
    %c0_i32_0 = arith.constant 0 : i32
    %c0_i32_1 = arith.constant 0 : i32
    return %c0_i32, %c0_i32_0 : i32, i32
  }
  func.func @transform_2(%arg0: i32) -> (i32, i32) {
    %c0_i32 = arith.constant 0 : i32
    %c0_i32_0 = arith.constant 0 : i32
    %c0_i32_1 = arith.constant 0 : i32
    return %c0_i32, %c0_i32_0 : i32, i32
  }
  func.func @transform_3(%arg0: i32) -> (i32, i32) {
    %c0_i32 = arith.constant 0 : i32
    %c0_i32_0 = arith.constant 0 : i32
    %c0_i32_1 = arith.constant 0 : i32
    return %c0_i32, %c0_i32_0 : i32, i32
  }
  func.func @transform_4(%arg0: i32) -> (i32, i32) {
    %c0_i32 = arith.constant 0 : i32
    %c0_i32_0 = arith.constant 0 : i32
    %c0_i32_1 = arith.constant 0 : i32
    return %c0_i32, %c0_i32_0 : i32, i32
  }
  func.func @transform_5(%arg0: i32) -> (i32, i32) {
    %c0_i32 = arith.constant 0 : i32
    %c0_i32_0 = arith.constant 0 : i32
    return %arg0, %c0_i32 : i32, i32
  }
}

</mosaic_0001>

<bundles_post_ra>
// kernel: tpu_custom_call.1
= control target key start
LH: loop header
LB: loop body
LE: loop exit
PB: predicated region body
PF: predicated region fallthrough
CT: control target
= control target key end

     0   :  { %10 = vsyncpa [#allocation3], 0  ;;  %s626_s0 = inlined_call_operand.hbm [shape: bf16[16,128], index: 0, kind: input, shape index: {}]   ;;  %s627_s1 = inlined_call_operand.hbm [shape: bf16[128,128], index: 1, kind: input, shape index: {}]   ;;  %s628_s2 = inlined_call_operand.vmem [shape: f32[1,128], index: 2, kind: input, shape index: {}]   ;;  %s629_s3 = inlined_call_operand.hbm [shape: bf16[128,128], index: 3, kind: input, shape index: {}]   ;;  %s630_s4 = inlined_call_operand.vmem [shape: f32[1,128], index: 4, kind: input, shape index: {}]   ;;  %s631_s5 = inlined_call_operand.hbm [shape: f32[16,128], index: 5, kind: output, shape index: {}]  }
   0x1   :  { %11 = vsyncpa [#allocation6], 0 }
   0x2   :  { %12 = vsyncpa [#allocation4], 0  ;;  %s516_s18 = smov [#allocation5]   ;;  %s517_s20 = smov [#allocation2]  }
   0x3   :  { %s30_s19 = sshll.u32 %s516_s18, 4  ;;  %s18_s21 = sshll.u32 %s517_s20, 4  ;;  %s31_s19 = int_to_ptr.vmem [resolvable:$true] %s30_s19  ;;  %s556_s21 = int_to_ptr.vmem [resolvable:$true] %s18_s21 }
   0x4   :  { %s422_s24 = scalar_lea.hbm %s627_s1, 1024 }
   0x5   :  { %p423_p0 = scmp.ne.s32.totalorder %s627_s1, %s422_s24  ;;  %p426_p1 = scmp.lt.u32.totalorder %s422_s24, %s627_s1 }
   0x7   :  { %p428_p2 = pnand %p426_p1, %p423_p0 }
   0x9   :  { %431 = shalt.err (!%p428_p2)
}
   0xa   :  { %s432_s29 = scalar_lea.vmem %s31_s19, 1024  ;;  %p437_p4 = scmp.lt.s32.totalorder %s31_s19, %s31_s19 }
   0xb   :  { %p433_p3 = scmp.ne.s32.totalorder %s31_s19, %s432_s29  ;;  %p438_p5 = scmp.lt.s32.totalorder %s432_s29, %s432_s29 }
   0xd   :  { %p439_p6 = por %p438_p5, %p437_p4 }
   0xf   :  { %p440_p7 = pnand %p439_p6, %p433_p3 }
  0x11   :  { %443 = shalt.err (!%p440_p7)
}
  0x12   :  { %s518_s30 = smov 64   ;;  %s519_s6 = smov 4  }
  0x13   :  { %36 = dma.hbm_to_vmem [thread:$0]  %s627_s1, 1024, %s31_s19, [#allocation6], %s518_s30, %s518_s30, %s519_s6  }
  0x14   :  { %s444_s11 = scalar_lea.hbm %s626_s0, 128 }
  0x15   :  { %p445_p8 = scmp.ne.s32.totalorder %s626_s0, %s444_s11  ;;  %p448_p9 = scmp.lt.u32.totalorder %s444_s11, %s626_s0 }
  0x17   :  { %p450_p10 = pnand %p448_p9, %p445_p8 }
  0x19   :  { %453 = shalt.err (!%p450_p10)
}
  0x1a   :  { %s454_s16 = scalar_lea.vmem %s556_s21, 128  ;;  %p459_p12 = scmp.lt.s32.totalorder %s556_s21, %s556_s21 }
  0x1b   :  { %p455_p11 = scmp.ne.s32.totalorder %s556_s21, %s454_s16  ;;  %p460_p13 = scmp.lt.s32.totalorder %s454_s16, %s454_s16 }
  0x1d   :  { %p461_p0 = por %p460_p13, %p459_p12 }
  0x1f   :  { %p462_p1 = pnand %p461_p0, %p455_p11 }
  0x21   :  { %465 = shalt.err (!%p462_p1)
}
  0x22   :  { %24 = dma.hbm_to_vmem [thread:$0]  %s626_s0, 128, %s556_s21, [#allocation3], %s518_s30, %s518_s30, %s519_s6  }
  0x23   :  { %s520_s18 = smov [#allocation7]   ;;  %s466_s23 = scalar_lea.hbm %s629_s3, 1024 }
  0x24   :  { %s44_s19 = sshll.u32 %s520_s18, 4  ;;  %p467_p2 = scmp.ne.s32.totalorder %s629_s3, %s466_s23  ;;  %s45_s19 = int_to_ptr.vmem [resolvable:$true] %s44_s19 }
  0x25   :  { %p470_p3 = scmp.lt.u32.totalorder %s466_s23, %s629_s3 }
  0x27   :  { %p472_p4 = pnand %p470_p3, %p467_p2 }
  0x29   :  { %475 = shalt.err (!%p472_p4)
}
  0x2a   :  { %s476_s28 = scalar_lea.vmem %s45_s19, 1024  ;;  %p481_p6 = scmp.lt.s32.totalorder %s45_s19, %s45_s19 }
  0x2b   :  { %p477_p5 = scmp.ne.s32.totalorder %s45_s19, %s476_s28  ;;  %p482_p7 = scmp.lt.s32.totalorder %s476_s28, %s476_s28 }
  0x2d   :  { %p483_p8 = por %p482_p7, %p481_p6 }
  0x2f   :  { %p484_p9 = pnand %p483_p8, %p477_p5 }
  0x31   :  { %487 = shalt.err (!%p484_p9)
}
  0x32   :  { %50 = dma.hbm_to_vmem [thread:$0]  %s629_s3, 1024, %s45_s19, [#allocation6], %s518_s30, %s518_s30, %s519_s6  }
  0x33   :  { %510 = dma.done.wait [#allocation3], 128  }
  0x34   :  { %511 = vsyncadd [#allocation3], 4294967168 }
  0x35   :  { %512 = dma.done.wait [#allocation6], 2048  }
  0x36   :  { %513 = vsyncadd [#allocation6], 4294965248  ;;  %v521_v0 = vmov 0.0   ;;  %vm522_vm0 = vmmov 0   ;;  %v405_v1 = vld [vmem:[#allocation5] sm:$0xff]   ;;  %v406_v2 = vld [vmem:[#allocation5 + $0x8] sm:$0xff]  }
  0x37   :  { %355 = vmatprep.subr.bf16.mxu0 %v521_v0  ;;  %371 = vmatprep.mubr.msk.bf16.mxu0 %vm522_vm0, %v521_v0  ;;  %v407_v3 = vld [vmem:[#allocation5 + $0x10] sm:$0xff]   ;;  %v414_v4 = vld [vmem:[#allocation7] sm:$0xff]   ;;  %v408_v5 = vld [vmem:[#allocation5 + $0x18] sm:$0xff]   ;;  %s523_s7 = smov [#allocation8]  }
  0x38   :  { %375 = vmatprep.subr.bf16.mxu1 %v521_v0  ;;  %391 = vmatprep.mubr.msk.bf16.mxu1 %vm522_vm0, %v521_v0  ;;  %v415_v6 = vld [vmem:[#allocation7 + $0x8] sm:$0xff]   ;;  %v409_v7 = vld [vmem:[#allocation5 + $0x20] sm:$0xff]   ;;  %v416_v8 = vld [vmem:[#allocation7 + $0x10] sm:$0xff]   ;;  %s305_s8 = sshll.u32 %s523_s7, 4  ;;  %s306_s8 = int_to_ptr.vmem [resolvable:$true] %s305_s8 }
  0x39   :  { %356 = vmatpush3.bf16.msra.mxu0 %v405_v1  ;;  %376 = vmatpush3.bf16.msra.mxu1 %v414_v4  ;;  %v410_v9 = vld [vmem:[#allocation5 + $0x28] sm:$0xff]   ;;  %v417_v10 = vld [vmem:[#allocation7 + $0x18] sm:$0xff]   ;;  %v411_v11 = vld [vmem:[#allocation5 + $0x30] sm:$0xff]   ;;  %p493_p11 = scmp.lt.s32.totalorder %s306_s8, %s306_s8 }
  0x3a   :  { %357 = vmatprep.subr.bf16.mxu0 %v521_v0  ;;  %377 = vmatprep.subr.bf16.mxu1 %v521_v0  ;;  %v418_v12 = vld [vmem:[#allocation7 + $0x20] sm:$0xff]   ;;  %v412_v13 = vld [vmem:[#allocation5 + $0x38] sm:$0xff]   ;;  %v419_v14 = vld [vmem:[#allocation7 + $0x28] sm:$0xff]  }
  0x3b   :  { %v413_v15 = vld [vmem:[#allocation2] sm:$0xff]   ;;  %v420_v16 = vld [vmem:[#allocation7 + $0x30] sm:$0xff]  }
  0x3c   :  { %v421_v17 = vld [vmem:[#allocation7 + $0x38] sm:$0xff]  }
  0x3d   :  { %358 = vmatpush3.bf16.msra.mxu0 %v406_v2  ;;  %378 = vmatpush3.bf16.msra.mxu1 %v415_v6  ;;  %v318_v18 = vld [vmem:[%s628_s2] ss:$0 sm:$0xff]  ;;  %s488_s2 = scalar_lea.vmem %s306_s8, 256 }
  0x3e   :  { %359 = vmatprep.subr.bf16.mxu0 %v521_v0  ;;  %379 = vmatprep.subr.bf16.mxu1 %v521_v0  ;;  %v328_v28 = vld [vmem:[%s630_s4] ss:$0 sm:$0xff]  ;;  %p489_p10 = scmp.ne.s32.totalorder %s306_s8, %s488_s2  ;;  %p494_p12 = scmp.lt.s32.totalorder %s488_s2, %s488_s2 }
  0x40   :  { %p495_p13 = por %p494_p12, %p493_p11 }
  0x41   :  { %360 = vmatpush3.bf16.msra.mxu0 %v407_v3  ;;  %380 = vmatpush3.bf16.msra.mxu1 %v416_v8 }
  0x42   :  { %361 = vmatprep.subr.bf16.mxu0 %v521_v0  ;;  %381 = vmatprep.subr.bf16.mxu1 %v521_v0  ;;  %p496_p0 = pnand %p495_p13, %p489_p10 }
  0x45   :  { %362 = vmatpush3.bf16.msra.mxu0 %v408_v5  ;;  %382 = vmatpush3.bf16.msra.mxu1 %v417_v10 }
  0x46   :  { %363 = vmatprep.subr.bf16.mxu0 %v521_v0  ;;  %383 = vmatprep.subr.bf16.mxu1 %v521_v0 }
  0x49   :  { %364 = vmatpush3.bf16.msra.mxu0 %v409_v7  ;;  %384 = vmatpush3.bf16.msra.mxu1 %v418_v12 }
  0x4a   :  { %365 = vmatprep.subr.bf16.mxu0 %v521_v0  ;;  %385 = vmatprep.subr.bf16.mxu1 %v521_v0 }
  0x4d   :  { %366 = vmatpush3.bf16.msra.mxu0 %v410_v9  ;;  %386 = vmatpush3.bf16.msra.mxu1 %v419_v14 }
  0x4e   :  { %367 = vmatprep.subr.bf16.mxu0 %v521_v0  ;;  %387 = vmatprep.subr.bf16.mxu1 %v521_v0 }
  0x51   :  { %368 = vmatpush3.bf16.msra.mxu0 %v411_v11  ;;  %388 = vmatpush3.bf16.msra.mxu1 %v420_v16 }
  0x52   :  { %369 = vmatprep.subr.bf16.mxu0 %v521_v0  ;;  %389 = vmatprep.subr.bf16.mxu1 %v521_v0 }
  0x55   :  { %370 = vmatpush3.bf16.msra.mxu0 %v412_v13  ;;  %390 = vmatpush3.bf16.msra.mxu1 %v421_v17 }
  0x58   :  { %372 = vmatmul.mubr.bf16.vlgmr.msra.gmra.mrb[0].mxu0 %v413_v15 }
 0x12b   :  { %v176_v19 = vpop.f32.mrb[0].mxu0 }
 0x12c   :  { %v177_v20 = vadd.f32 %v318_v18, %v176_v19  ;;  %v373_v21 = vpop.f32.mrb[1].mxu0 }
 0x12d   :  { %v179_v22 = vpop.f32.mrb[2].mxu0 }
 0x12e   :  { %v180_v23 = vadd.f32 %v318_v18, %v179_v22  ;;  %v374_v24 = vpop.f32.mrb[3].mxu0  ;;  %v183_v25 = vmax.f32 %v177_v20, 0.0 }
 0x130   :  { %v184_v26 = vmax.f32 %v180_v23, 0.0 }
 0x132   :  { %v185_v27 = vpack.c.bf16 %v184_v26, %v183_v25 }
 0x134   :  { %392 = vmatmul.mubr.bf16.vlgmr.msra.gmra.mrb[0].mxu1 %v185_v27 }
 0x207   :  { %v291_v29 = vpop.f32.mrb[0].mxu1 }
 0x208   :  { %v292_v30 = vadd.f32 %v328_v28, %v291_v29  ;;  %v393_v31 = vpop.f32.mrb[1].mxu1 }
 0x209   :  { %v294_v32 = vpop.f32.mrb[2].mxu1 }
 0x20a   :  { %298 = vst [vmem:[#allocation8] sm:$0xff] %v292_v30  ;;  %v295_v33 = vadd.f32 %v328_v28, %v294_v32  ;;  %v394_v34 = vpop.f32.mrb[3].mxu1 }
 0x20c   :  { %299 = vst [vmem:[#allocation8 + $0x8] sm:$0xff] %v295_v33 }
 0x20d   :  { %499 = shalt.err (!%p496_p0)
}
 0x20e   :  { %s500_s10 = scalar_lea.hbm %s631_s5, 256 }
 0x20f   :  { %p501_p1 = scmp.ne.s32.totalorder %s631_s5, %s500_s10  ;;  %p504_p2 = scmp.lt.u32.totalorder %s500_s10, %s631_s5 }
 0x211   :  { %p506_p3 = pnand %p504_p2, %p501_p1 }
 0x213   :  { %509 = shalt.err (!%p506_p3)
}
 0x214   :  { %s524_s15 = smov 128   ;;  %s525_s16 = smov 8  }
 0x215   :  { %311 = dma.vmem_to_hbm [thread:$0]  %s306_s8, 256, %s631_s5, [#allocation4], %s524_s15, %s524_s15, %s525_s16  }
 0x216   :  { %514 = dma.done.wait [#allocation4], 256  }
 0x217   :  { %515 = vsyncadd [#allocation4], 4294967040 }
 0x218   :  { %315 = vsyncpa [#allocation3], 1 }
 0x219   :  { %316 = vsyncpa [#allocation6], 1 }
 0x21a   :  { %317 = vsyncpa [#allocation4], 1 }

</bundles_post_ra>
